<compile_context>
chip_gen: v7x
topology: tpu7x:2x2x1
jax: 0.10.0
libtpu: 0.0.40
codegen_flags: <defaults>
</compile_context>

<pallas_src>
import functools

import jax
import jax.numpy as jnp
from jax.experimental import pallas as pl
from jax.experimental.pallas import tpu as pltpu


# ---------------------------------------------------------------------------
# Small helpers
# ---------------------------------------------------------------------------
def _round_up(v, m):
    return ((v + m - 1) // m) * m


def _pad_last(a, target):
    pad = target - a.shape[-1]
    if pad == 0:
        return a
    return jnp.pad(a, [(0, 0)] * (a.ndim - 1) + [(0, pad)])


def _vmem_cap_bytes():
    """Physical VMEM of the current chip (v5e/v6e: 128 MiB, v7x: 64 MiB/TC)."""
    try:
        cap = int(pltpu.get_tpu_info().vmem_capacity_bytes)
        if cap > 0:
            return cap
    except Exception:
        pass
    return 64 * 1024 * 1024  # conservative default (v7x per-TC VMEM)


def _plan_lane_tiles(total_lanes, per_lane_bytes, n_outer, *, budget_bytes,
                     min_lanes=512, max_lanes=8192):
    """Pick a lane tile (multiple of 128) sized against a VMEM budget.

    Returns (tile, num_tiles, padded_total_lanes)."""
    lanes_pad = _round_up(max(int(total_lanes), 1), 128)
    t = (int(budget_bytes) // max(int(per_lane_bytes), 1)) // 128 * 128
    t = max(128, min(t, max_lanes))
    t = min(t, lanes_pad)
    t = max(t, min(min_lanes, lanes_pad))
    # v7x has 2 TensorCores: make sure there are >= 2 total grid steps.
    if n_outer * pl.cdiv(lanes_pad, t) < 2 and lanes_pad >= 256:
        t = _round_up(pl.cdiv(lanes_pad, 2), 128)
    # Re-balance so padding is spread across tiles (<= 127 lanes per tile).
    ntiles = pl.cdiv(lanes_pad, t)
    t = _round_up(pl.cdiv(lanes_pad, ntiles), 128)
    return t, ntiles, ntiles * t


def _vmem_limit_from_blocks(stream_bytes, cap):
    """Scoped-VMEM limit derived from the live block bytes, with headroom."""
    limit = int(stream_bytes) + max(int(stream_bytes) // 2, 4 * 1024 * 1024)
    limit = max(limit, 16 * 1024 * 1024)
    limit = min(limit, int(cap * 3) // 4)
    return int(limit)


# ---------------------------------------------------------------------------
# Fused kernels: concat (via split weights) + 1x1 conv + precomputed emb bias
# ---------------------------------------------------------------------------
def _fused_skip_timestep_kernel(skip_ref, x_ref, bias_ref, w_skip_ref, w_x_ref,
                                out_ref):
    # skip_ref : (1, C1, Thw)   x_ref : (1, C2, Thw)
    # bias_ref : (1, Cout, 1) f32   w_skip_ref : (Cout, C1)   w_x_ref : (Cout, C2)
    # out_ref  : (1, Cout, Thw)
    acc = jnp.dot(w_skip_ref[...], skip_ref[0],
                  preferred_element_type=jnp.float32)
    acc = acc + jnp.dot(w_x_ref[...], x_ref[0],
                        preferred_element_type=jnp.float32)
    # bias is column-oriented (Cout, 1) f32: broadcasts over lanes, no XLU
    # transpose in the kernel.
    out_ref[0] = (acc + bias_ref[0]).astype(out_ref.dtype)


def _fused_flat_kernel(skip_ref, x_ref, bias_ref, w_skip_ref, w_x_ref, out_ref):
    # Lane axis = N*H*W (small-spatial layers); bias is pre-broadcast per lane.
    # skip_ref : (C1, Tl)  x_ref : (C2, Tl)  bias_ref : (Cout, Tl) f32
    acc = jnp.dot(w_skip_ref[...], skip_ref[...],
                  preferred_element_type=jnp.float32)
    acc = acc + jnp.dot(w_x_ref[...], x_ref[...],
                        preferred_element_type=jnp.float32)
    out_ref[...] = (acc + bias_ref[...]).astype(out_ref.dtype)


def fused_skip_timestep_fn(skip, x, emb, params, *, compute_dtype=jnp.bfloat16):
    """y = W @ cat([skip, x], dim=1) + (emb @ We.T + b + be), NCHW in/out.

    Equivalent to fn(cat([skip, x], 1), emb) for the synthetic TimestepBlock,
    but the concatenated activation is never written to HBM.

    compute_dtype: dtype used for the streamed activations / weights
      (accumulation is always f32 on the MXU). None -> keep input dtype.
    """
    n, c1, h, w = skip.shape
    c2 = x.shape[1]
    hw = h * w
    cout = params["w"].shape[0]
    out_dtype = x.dtype
    in_dtype = jnp.dtype(compute_dtype) if compute_dtype is not None else jnp.dtype(x.dtype)
    in_bytes = in_dtype.itemsize
    out_bytes = jnp.dtype(out_dtype).itemsize

    # Zero-cost wrapper plumbing: split the 1x1-conv weight along its input
    # channels instead of concatenating the activations.
    # TODO(synk): for v5e big-channel bf16 layers (MXU-bound there), pad
    # Cout / C1 / C2 to multiples of 128 so the MXU rows are fully used.
    w_skip = params["w"][:, :c1].astype(in_dtype)
    w_x = params["w"][:, c1:].astype(in_dtype)

    # Per-sample bias precompute (tiny (N,E)x(E,Cout) op), folded with b + be
    # at trace time; kept in f32.
    bias_nc = (emb.astype(jnp.float32) @ params["we"].T.astype(jnp.float32)
               + params["b"].astype(jnp.float32)
               + params["be"].astype(jnp.float32))            # (N, Cout) f32

    skip2 = skip.astype(in_dtype).reshape(n, c1, hw)
    x2 = x.astype(in_dtype).reshape(n, c2, hw)

    cap = _vmem_cap_bytes()
    budget = min(20 * 1024 * 1024, cap // 5)   # streaming-block budget per step

    if hw < 128:
        # --- Small-spatial path: lane axis = N*H*W (lane-dense stores). ---
        total = n * hw
        skip_t = skip2.transpose(1, 0, 2).reshape(c1, total)
        x_t = x2.transpose(1, 0, 2).reshape(c2, total)
        bias_b = jnp.repeat(bias_nc.T, hw, axis=1)             # (Cout, N*HW) f32

        per_lane = (2 * (c1 + c2) * in_bytes + 2 * cout * out_bytes
                    + 3 * cout * 4)                            # + bias + f32 acc
        tl, ntiles, total_pad = _plan_lane_tiles(total, per_lane, 1,
                                                 budget_bytes=budget)
        skip_t = _pad_last(skip_t, total_pad)
        x_t = _pad_last(x_t, total_pad)
        bias_b = _pad_last(bias_b, total_pad)

        stream = (per_lane * tl + 2 * cout * (c1 + c2) * in_bytes)
        out = pl.pallas_call(
            _fused_flat_kernel,
            out_shape=jax.ShapeDtypeStruct((cout, total_pad), out_dtype),
            grid=(ntiles,),
            in_specs=[
                pl.BlockSpec((c1, tl), lambda j: (0, j)),
                pl.BlockSpec((c2, tl), lambda j: (0, j)),
                pl.BlockSpec((cout, tl), lambda j: (0, j)),
                pl.BlockSpec((cout, c1), lambda j: (0, 0)),
                pl.BlockSpec((cout, c2), lambda j: (0, 0)),
            ],
            out_specs=pl.BlockSpec((cout, tl), lambda j: (0, j)),
            compiler_params=pltpu.CompilerParams(
                dimension_semantics=("parallel",),
                vmem_limit_bytes=_vmem_limit_from_blocks(stream, cap),
            ),
        )(skip_t, x_t, bias_b, w_skip, w_x)
        out = out[:, :total].reshape(cout, n, hw).transpose(1, 0, 2)
        return out.reshape(n, cout, h, w)

    # --- Main path: grid over (batch, spatial tiles). ---
    per_lane = (2 * (c1 + c2) * in_bytes + 2 * cout * out_bytes
                + cout * 4)                                    # + f32 acc
    thw, ntiles, hw_pad = _plan_lane_tiles(hw, per_lane, n, budget_bytes=budget)
    skip2 = _pad_last(skip2, hw_pad)
    x2 = _pad_last(x2, hw_pad)
    bias = bias_nc.reshape(n, cout, 1)

    # TODO(synk): grid-invariant weight blocks could be single-buffered
    # (pipeline_mode=pl.Buffered(1)) to reclaim VMEM on v7x; left default-
    # buffered here since they are small relative to the tile budget.
    stream = (per_lane * thw + 2 * cout * (c1 + c2) * in_bytes + 2 * cout * 4)
    out = pl.pallas_call(
        _fused_skip_timestep_kernel,
        out_shape=jax.ShapeDtypeStruct((n, cout, hw_pad), out_dtype),
        grid=(n, ntiles),
        in_specs=[
            pl.BlockSpec((1, c1, thw), lambda i, j: (i, 0, j)),   # skip tile
            pl.BlockSpec((1, c2, thw), lambda i, j: (i, 0, j)),   # x tile
            pl.BlockSpec((1, cout, 1), lambda i, j: (i, 0, 0)),   # per-sample bias
            pl.BlockSpec((cout, c1), lambda i, j: (0, 0)),        # W[:, :C1]
            pl.BlockSpec((cout, c2), lambda i, j: (0, 0)),        # W[:, C1:]
        ],
        out_specs=pl.BlockSpec((1, cout, thw), lambda i, j: (i, 0, j)),
        compiler_params=pltpu.CompilerParams(
            dimension_semantics=("parallel", "parallel"),
            vmem_limit_bytes=_vmem_limit_from_blocks(stream, cap),
        ),
    )(skip2, x2, bias, w_skip, w_x)
    return out[..., :hw].reshape(n, cout, h, w)


# ---------------------------------------------------------------------------
# Fallback: standalone channel concat (only needed for a truly opaque `fn`)
# ---------------------------------------------------------------------------
def _concat_channels_kernel(skip_ref, x_ref, out_ref):
    # Direct slice stores (no jnp.concatenate -> no fused vreg array / XLU
    # shuffle); this is a straight copy at HBM bandwidth.
    # TODO(synk): if c1 is not a multiple of the dtype sublane tile (8 f32 /
    # 16 bf16), the second store starts mid-tile and becomes a masked store;
    # pad the channel split in that case.
    c1 = skip_ref.shape[1]
    out_ref[0, :c1] = skip_ref[0]
    out_ref[0, c1:] = x_ref[0]


def concat_channels(skip, x):
    """cat([skip, x], dim=1) for NCHW tensors, as a Pallas copy kernel."""
    n, c1, h, w = skip.shape
    c2 = x.shape[1]
    hw = h * w
    itemsize = jnp.dtype(x.dtype).itemsize
    cap = _vmem_cap_bytes()
    per_lane = 4 * (c1 + c2) * itemsize          # double-buffered in + out
    thw, ntiles, hw_pad = _plan_lane_tiles(hw, per_lane, n,
                                           budget_bytes=min(20 * 1024 * 1024,
                                                            cap // 5))
    skip2 = _pad_last(skip.reshape(n, c1, hw), hw_pad)
    x2 = _pad_last(x.reshape(n, c2, hw), hw_pad)
    out = pl.pallas_call(
        _concat_channels_kernel,
        out_shape=jax.ShapeDtypeStruct((n, c1 + c2, hw_pad), x.dtype),
        grid=(n, ntiles),
        in_specs=[
            pl.BlockSpec((1, c1, thw), lambda i, j: (i, 0, j)),
            pl.BlockSpec((1, c2, thw), lambda i, j: (i, 0, j)),
        ],
        out_specs=pl.BlockSpec((1, c1 + c2, thw), lambda i, j: (i, 0, j)),
        compiler_params=pltpu.CompilerParams(
            dimension_semantics=("parallel", "parallel"),
            vmem_limit_bytes=_vmem_limit_from_blocks(per_lane * thw, cap),
        ),
    )(skip2, x2)
    return out[..., :hw].reshape(n, c1 + c2, h, w)


# ---------------------------------------------------------------------------
# Module wrapper mirroring TakeFromSkipConnection.forward
# ---------------------------------------------------------------------------
class TakeFromSkipConnection:
    # TODO(synk): the original `fn` is an arbitrary injected TimestepBlock; here
    # it is a deterministic synthetic stand-in (1x1 conv + emb bias) whose
    # channel concat is fused via weight splitting.  For an opaque fn, use
    # concat_channels(skip, x) and call fn(with_skip, emb) instead.
    # TODO(synk): skips.pop() on a Python list only works eagerly (not under
    # jit/scan of the surrounding module), matching the original eager module.

    def __init__(self, fn, skips, expected_channels):
        self.fn = fn
        self.skips = skips            # python list used as a stack
        self.expected_channels = expected_channels

    def forward(self, x, emb, **kwargs):
        skip = self.skips.pop()
        assert skip.shape[1] == self.expected_channels, (
            f"expected skip connection channels {skip.shape[1]} != "
            f"{self.expected_channels}"
        )
        # cat([skip, x], dim=1) is fused inside fn (weight split along the
        # channel axis) -> no HBM round-trip for the concatenated activation.
        return self.fn(skip, x, emb, **kwargs)


if __name__ == "__main__":
    key = jax.random.PRNGKey(0)
    k_x, k_s, k_e, k_w, k_b, k_we, k_be = jax.random.split(key, 7)

    # Small shapes: batch=2, channels=4 (+4 skip), spatial=16x16, emb=32, out=8
    N, C, H, W, E, COUT = 2, 4, 16, 16, 32, 8

    x = jax.random.normal(k_x, (N, C, H, W), dtype=jnp.float32)
    skip = jax.random.normal(k_s, (N, C, H, W), dtype=jnp.float32)
    emb = jax.random.normal(k_e, (N, E), dtype=jnp.float32)

    params = {
        "w": 0.1 * jax.random.normal(k_w, (COUT, 2 * C), dtype=jnp.float32),
        "b": 0.1 * jax.random.normal(k_b, (1, COUT), dtype=jnp.float32),
        "we": 0.1 * jax.random.normal(k_we, (COUT, E), dtype=jnp.float32),
        "be": 0.1 * jax.random.normal(k_be, (1, COUT), dtype=jnp.float32),
    }

    def ref_forward(skip_a, x_a, emb_a):
        with_skip = jnp.concatenate([skip_a, x_a], axis=1)
        return (jnp.einsum("oc,nchw->nohw", params["w"], with_skip)
                + (emb_a @ params["we"].T)[:, :, None, None]
                + params["b"].reshape(1, COUT, 1, 1)
                + params["be"].reshape(1, COUT, 1, 1))

    # --- Module forward (default bf16 streaming, f32 accumulate) -----------
    fused_bf16 = functools.partial(fused_skip_timestep_fn, params=params)
    module = TakeFromSkipConnection(fused_bf16, skips=[skip], expected_channels=C)
    y = jax.block_until_ready(module.forward(x, emb))
    ref = ref_forward(skip, x, emb)
    assert y.shape == (N, COUT, H, W)
    assert jnp.allclose(y, ref, atol=3e-2, rtol=3e-2)          # bf16 tolerance

    # --- f32 path (compute_dtype=None) at tight tolerance ------------------
    y32 = jax.block_until_ready(
        fused_skip_timestep_fn(skip, x, emb, params, compute_dtype=None))
    assert jnp.allclose(y32, ref, atol=1e-5, rtol=1e-5)

    # --- Non-128-aligned spatial size (padded-tile path) -------------------
    x12 = jax.random.normal(k_x, (N, C, 12, 12), dtype=jnp.float32)
    s12 = jax.random.normal(k_s, (N, C, 12, 12), dtype=jnp.float32)
    y12 = jax.block_until_ready(fused_skip_timestep_fn(s12, x12, emb, params))
    assert jnp.allclose(y12, ref_forward(s12, x12, emb), atol=3e-2, rtol=3e-2)

    # --- Small spatial size (H*W < 128 -> lane axis = N*H*W flat path) -----
    x8 = jax.random.normal(k_x, (N, C, 8, 8), dtype=jnp.float32)
    s8 = jax.random.normal(k_s, (N, C, 8, 8), dtype=jnp.float32)
    y8 = jax.block_until_ready(fused_skip_timestep_fn(s8, x8, emb, params))
    assert jnp.allclose(y8, ref_forward(s8, x8, emb), atol=3e-2, rtol=3e-2)

    # --- N == 1 (spatial axis is split so the grid has >= 2 steps) ---------
    y1 = jax.block_until_ready(
        fused_skip_timestep_fn(skip[:1], x[:1], emb[:1], params,
                               compute_dtype=None))
    assert jnp.allclose(y1, ref_forward(skip[:1], x[:1], emb[:1]),
                        atol=1e-5, rtol=1e-5)

    # --- Fallback copy-only concat kernel (for opaque fn) ------------------
    cat = jax.block_until_ready(concat_channels(skip, x))
    assert jnp.array_equal(cat, jnp.concatenate([skip, x], axis=1))

    print("KERNEL_OK")
</pallas_src>

<mosaic_0001>
module attributes {stable_mosaic.version = 11 : i64} {
  func.func @_fused_skip_timestep_kernel(%arg0: i32, %arg1: i32, %arg2: memref<1x4x256xbf16, #tpu.memory_space<vmem>>, %arg3: memref<1x4x256xbf16, #tpu.memory_space<vmem>>, %arg4: memref<1x8x1xf32, #tpu.memory_space<vmem>>, %arg5: memref<8x4xbf16, #tpu.memory_space<vmem>>, %arg6: memref<8x4xbf16, #tpu.memory_space<vmem>>, %arg7: memref<1x8x256xf32, #tpu.memory_space<vmem>>) attributes {dimension_semantics = [#tpu.dimension_semantics<parallel>, #tpu.dimension_semantics<parallel>], iteration_bounds = array<i64: 2, 1>, scalar_prefetch = 0 : i64, scratch_operands = 0 : i64, tpu.core_type = #tpu.core_type<tc>, window_params = [{transform_indices = @transform_0, window_bounds = array<i64: 1, 4, 256>}, {transform_indices = @transform_1, window_bounds = array<i64: 1, 4, 256>}, {transform_indices = @transform_2, window_bounds = array<i64: 1, 8, 1>}, {pipeline_mode = #tpu.pipeline_mode<synchronous>, transform_indices = @transform_3, window_bounds = array<i64: 8, 4>}, {pipeline_mode = #tpu.pipeline_mode<synchronous>, transform_indices = @transform_4, window_bounds = array<i64: 8, 4>}, {transform_indices = @transform_5, window_bounds = array<i64: 1, 8, 256>}]} {
    %c0 = arith.constant 0 : index
    %c0_0 = arith.constant 0 : index
    %0 = vector.load %arg5[%c0, %c0_0] : memref<8x4xbf16, #tpu.memory_space<vmem>>, vector<8x4xbf16>
    %c0_1 = arith.constant 0 : index
    %c0_2 = arith.constant 0 : index
    %c0_3 = arith.constant 0 : index
    %1 = vector.load %arg2[%c0_1, %c0_2, %c0_3] : memref<1x4x256xbf16, #tpu.memory_space<vmem>>, vector<1x4x256xbf16>
    %2 = vector.shape_cast %1 : vector<1x4x256xbf16> to vector<4x256xbf16>
    %cst = arith.constant dense<0.000000e+00> : vector<8x256xf32>
    %3 = tpu.matmul %0, %2, %cst {dimension_numbers = #tpu.dot_dimension_numbers<[1], [0], [0], [1], [0, 0, 1, 1], [], []>} : vector<8x4xbf16>, vector<4x256xbf16>, vector<8x256xf32> -> vector<8x256xf32>
    %c0_4 = arith.constant 0 : index
    %c0_5 = arith.constant 0 : index
    %4 = vector.load %arg6[%c0_4, %c0_5] : memref<8x4xbf16, #tpu.memory_space<vmem>>, vector<8x4xbf16>
    %c0_6 = arith.constant 0 : index
    %c0_7 = arith.constant 0 : index
    %c0_8 = arith.constant 0 : index
    %5 = vector.load %arg3[%c0_6, %c0_7, %c0_8] : memref<1x4x256xbf16, #tpu.memory_space<vmem>>, vector<1x4x256xbf16>
    %6 = vector.shape_cast %5 : vector<1x4x256xbf16> to vector<4x256xbf16>
    %cst_9 = arith.constant dense<0.000000e+00> : vector<8x256xf32>
    %7 = tpu.matmul %4, %6, %cst_9 {dimension_numbers = #tpu.dot_dimension_numbers<[1], [0], [0], [1], [0, 0, 1, 1], [], []>} : vector<8x4xbf16>, vector<4x256xbf16>, vector<8x256xf32> -> vector<8x256xf32>
    %8 = arith.addf %3, %7 : vector<8x256xf32>
    %c0_10 = arith.constant 0 : index
    %c0_11 = arith.constant 0 : index
    %c0_12 = arith.constant 0 : index
    %9 = vector.load %arg4[%c0_10, %c0_11, %c0_12] : memref<1x8x1xf32, #tpu.memory_space<vmem>>, vector<1x8x1xf32>
    %10 = vector.shape_cast %9 : vector<1x8x1xf32> to vector<8x1xf32>
    %11 = vector.broadcast %10 : vector<8x1xf32> to vector<8x256xf32>
    %12 = arith.addf %8, %11 : vector<8x256xf32>
    %c0_13 = arith.constant 0 : index
    %c0_14 = arith.constant 0 : index
    %c0_15 = arith.constant 0 : index
    %13 = vector.load %arg7[%c0_13, %c0_14, %c0_15] : memref<1x8x256xf32, #tpu.memory_space<vmem>>, vector<1x8x256xf32>
    %14 = vector.shape_cast %13 : vector<1x8x256xf32> to vector<8x256xf32>
    %15 = vector.shape_cast %12 : vector<8x256xf32> to vector<1x8x256xf32>
    tpu.vector_store %arg7[%c0_13, %c0_14, %c0_15], %15 {strides = array<i32>} : memref<1x8x256xf32, #tpu.memory_space<vmem>>, vector<1x8x256xf32>,
    return
  }
  func.func @transform_0(%arg0: i32, %arg1: i32) -> (i32, i32, i32) {
    %c0_i32 = arith.constant 0 : i32
    %c0_i32_0 = arith.constant 0 : i32
    return %arg0, %c0_i32, %arg1 : i32, i32, i32
  }
  func.func @transform_1(%arg0: i32, %arg1: i32) -> (i32, i32, i32) {
    %c0_i32 = arith.constant 0 : i32
    %c0_i32_0 = arith.constant 0 : i32
    return %arg0, %c0_i32, %arg1 : i32, i32, i32
  }
  func.func @transform_2(%arg0: i32, %arg1: i32) -> (i32, i32, i32) {
    %c0_i32 = arith.constant 0 : i32
    %c0_i32_0 = arith.constant 0 : i32
    %c0_i32_1 = arith.constant 0 : i32
    return %arg0, %c0_i32, %c0_i32_0 : i32, i32, i32
  }
  func.func @transform_3(%arg0: i32, %arg1: i32) -> (i32, i32) {
    %c0_i32 = arith.constant 0 : i32
    %c0_i32_0 = arith.constant 0 : i32
    %c0_i32_1 = arith.constant 0 : i32
    return %c0_i32, %c0_i32_0 : i32, i32
  }
  func.func @transform_4(%arg0: i32, %arg1: i32) -> (i32, i32) {
    %c0_i32 = arith.constant 0 : i32
    %c0_i32_0 = arith.constant 0 : i32
    %c0_i32_1 = arith.constant 0 : i32
    return %c0_i32, %c0_i32_0 : i32, i32
  }
  func.func @transform_5(%arg0: i32, %arg1: i32) -> (i32, i32, i32) {
    %c0_i32 = arith.constant 0 : i32
    %c0_i32_0 = arith.constant 0 : i32
    return %arg0, %c0_i32, %arg1 : i32, i32, i32
  }
}

</mosaic_0001>

<bundles_post_ra>
// kernel: tpu_custom_call.1
= control target key start
LH: loop header
LB: loop body
LE: loop exit
PB: predicated region body
PF: predicated region fallthrough
CT: control target
= control target key end

     0   :  { %10 = vsyncpa [#allocation3], 0  ;;  %s883_s0 = inlined_call_operand.vmem [shape: bf16[2,4,256], index: 0, kind: input, shape index: {}]   ;;  %s884_s1 = inlined_call_operand.vmem [shape: bf16[2,4,256], index: 1, kind: input, shape index: {}]   ;;  %s885_s2 = inlined_call_operand.vmem [shape: f32[2,8,1], index: 2, kind: input, shape index: {}]   ;;  %s886_s3 = inlined_call_operand.vmem [shape: bf16[8,4], index: 3, kind: input, shape index: {}]   ;;  %s887_s4 = inlined_call_operand.vmem [shape: bf16[8,4], index: 4, kind: input, shape index: {}]   ;;  %s888_s5 = inlined_call_operand.hbm [shape: f32[2,8,256], index: 5, kind: output, shape index: {}]  }
   0x1   :  { %12 = vsyncpa [#allocation3 + $0x1], 0  ;;  %s759_s18 = smov 0   ;;  %s761_s19 = smov 0  }
   0x2   :  { %s763_s20 = smov 0   ;;  %s765_s21 = smov 0  }
   0x3   :  { %s767_s22 = smov 0   ;;  %s769_s23 = smov 0  }
   0x4 LB: > { %s565_s24 = sadd.s32 4294967295, %s725_s23   ;;  %s566_s25 = sadd.s32 4294967294, %s725_s23   ;;  %s725_s23 = sphi %s769_s23, %s18_s23   ;;  %s721_s22 = sphi %s767_s22, %s895_s22   ;;  %s717_s21 = sphi %s765_s21, %s894_s21   ;;  %s713_s20 = sphi %s763_s20, %s893_s20   ;;  %s709_s19 = sphi %s761_s19, %s892_s19   ;;  %s705_s18 = sphi %s759_s18, %s891_s18  }
   0x5   : > { %s30_s26 = sadd.s32 1, %s721_s22  ;;  %s163_s27 = sadd.s32 1, %s713_s20 }
   0x6   : > { %p32_p0 = scmp.ge.s32.totalorder %s30_s26, 2  ;;  %p173_p1 = scmp.ne.s32.totalorder %s713_s20, %s709_s19 }
   0x7   : > { %p174_p2 = scmp.eq.s32.totalorder %s565_s24, 1  ;;  %p179_p3 = scmp.ne.s32.totalorder %s709_s19, %s705_s18 }
   0x8   : > { %s897_s26 = smov (%p32_p0, %s30_s26), 0  ;;  %p180_p5 = scmp.eq.s32.totalorder %s566_s25, 1 }
   0x9   : > { %p799_p4 = por %p174_p2, %p173_p1  ;;  %s158_s29 = ssub.s32 %s721_s22, %s897_s26 }
   0xa   : > { %p569_p6 = scmp.ge.s32.totalorder %s725_s23, 1  ;;  %p161_p7 = scmp.eq.s32.totalorder %s158_s29, 0 }
   0xb   : > { %p806_p8 = por %p180_p5, %p179_p3  ;;  %p237_p9 = scmp.lt.s32.totalorder %s725_s23, 3 }
   0xc   : > { %s812_s6 = scalar_select %p161_p7, %s713_s20, %s163_s27  }
   0xd   : > { %p238_p10 = pnand %p569_p6, %p237_p9 }
   0xe   : > { %p283_p11 = scmp.lt.s32.totalorder (!%p238_p10), %s717_s21, 1  ;;  %v727_v0 = vmov (!%p238_p10), 0   ;;  %vm325_vm0 = vcmask (!%p238_p10), 1041408   ;;  %v310_v8 = vld [vmem:[%s887_s4] sm:$0xf] (!%p238_p10)  ;;  %vm321_vm1 = vcmask (!%p238_p10), 31744  }
   0xf   : > { %241 = sbr.rel (%p238_p10) target bundleno = 265 (0x109), region = 40  ;;  %364 = vmatprep.mubr.bf16.mxu0 (!%p238_p10), %v727_v0  ;;  %423 = vmatprep.mubr.bf16.mxu1 (!%p238_p10), %v727_v0  ;;  %v308_v9 = vld [vmem:[%s886_s3] sm:$0xf] (!%p238_p10)  ;;  %s589_s10 = sshll.u32 (!%p238_p10), %s717_s21, 8 }
  0x10   : > { %646 = vset.pattern.permute.xlu0 (!%p238_p10), %v727_v0  ;;  %s728_s17 = smov (!%p238_p10), [#allocation2]  }
  0x16   : > { %s284_s7 = scalar_select %p283_p11, %s717_s21, 1 }
  0x18   : > { %s587_s8 = sshll.u32 %s284_s7, 2  ;;  %s575_s9 = sshll.u32 %s284_s7, 3 }
  0x19   : > { %s300_s12 = scalar_lea.vmem %s884_s1, %s587_s8  ;;  %s290_s15 = scalar_lea.vmem %s883_s0, %s587_s8 }
  0x1a   : > { %v576_v1 = vld.sshfl [vmem:[%s300_s12] sm:$0x33 pattern:$0x76325410]  ;;  %s305_s24 = scalar_lea.vmem %s885_s2, %s575_s9  ;;  %s279_s8 = sand.u32 1, %s709_s19  }
  0x1b   : > { %v320_v2 = vcombine.high %v576_v1, %v576_v1  ;;  %v579_v3 = vld.sshfl [vmem:[%s290_s15] sm:$0x33 pattern:$0x76325410]  ;;  %v327_v4 = vsel %vm325_vm0, %v576_v1, 0  ;;  %s570_s9 = sshll.u32 %s279_s8, 4  ;;  %s836_s15 = scalar_lea.hbm %s888_s5, %s589_s10 }
  0x1c   : > { %v432_v5 = vld [vmem:[%s305_s24] sm:$0xff]  ;;  %v381_v6 = vcombine.high %v579_v3, %v579_v3  ;;  %v386_v7 = vsel %vm325_vm0, %v579_v3, 0  ;;  %s281_s11 = scalar_lea.vmem [#allocation2], %s570_s9  ;;  %s443_s21 = scalar_lea.sflag [#allocation3], %s279_s8 }
  0x1d   : > { %435 = vperm.xlu0 %646, %v432_v5   ;;  %577 = vmatprep.subr.msk.bf16.mxu0 %vm325_vm0, %v320_v2  ;;  %s459_s12 = sshll.u32 %s281_s11, 4  ;;  %s651_s24 = sshll.u32 %s728_s17, 4  ;;  %s838_s12 = int_to_ptr.vmem [resolvable:$true] %s459_s12  ;;  %s652_s24 = int_to_ptr.vmem [resolvable:$false] %s651_s24 }
  0x1e   : > { %580 = vmatprep.subr.msk.bf16.mxu1 %vm325_vm0, %v381_v6  ;;  %333 = vmatpush1.bf16.msra.mxu0 %v327_v4  ;;  %s647_s16 = scalar_lea.vmem %s838_s12, 256  ;;  %s653_s25 = scalar_lea.vmem %s652_s24, 512 }
  0x1f   : > { %392 = vmatpush1.bf16.msra.mxu1 %v386_v7  ;;  %p648_p12 = scmp.ne.s32.totalorder %s838_s12, %s647_s16  ;;  %p654_p1 = scmp.lt.s32.totalorder %s838_s12, %s652_s24 }
  0x20   : > { %p655_p2 = scmp.lt.s32.totalorder %s653_s25, %s647_s16 }
  0x21   : > { %578 = vmatmul.mubr.msk.bf16.vlgmr.msra.gmra.mrb[0].mxu0 %vm321_vm1, %v310_v8  ;;  %p649_p13 = pnand %p648_p12, %p799_p4 }
  0x22   : > { %581 = vmatmul.mubr.msk.bf16.vlgmr.msra.gmra.mrb[0].mxu1 %vm321_vm1, %v308_v9  ;;  %p656_p3 = por %p655_p2, %p654_p1 }
  0x23   : > { %p650_p0 = pneg %p649_p13 }
  0x25   : > { %p657_p5 = pnand %p656_p3, %p650_p0 }
  0x9c   : > { %v436_v11 = vpop.permute.xlu0 %435 }
  0xf4   : > { %v366_v10 = vpop.f32.mrb[0].mxu0 }
  0xf5   : > { %v425_v12 = vpop.f32.mrb[0].mxu1  ;;  %v368_v13 = vpop.f32.mrb[1].mxu0 }
  0xf6   : > { %v426_v14 = vadd.f32 %v425_v12, %v366_v10  ;;  %v427_v15 = vpop.f32.mrb[1].mxu1  ;;  %v370_v16 = vpop.f32.mrb[2].mxu0 }
  0xf7   : > { %v428_v17 = vadd.f32 %v427_v15, %v368_v13  ;;  %v429_v18 = vpop.f32.mrb[2].mxu1  ;;  %v371_v19 = vpop.f32.mrb[3].mxu0 }
  0xf8   : > { %v438_v20 = vadd.f32 %v436_v11, %v426_v14  ;;  %v430_v21 = vpop.f32.mrb[3].mxu1 }
  0xf9   : > { %v439_v22 = vadd.f32 %v436_v11, %v428_v17 }
  0xfa   : > { %440 = vst [vmem:[%s281_s11] sm:$0xff] %v438_v20 }
  0xfb   : > { %441 = vst [vmem:[%s281_s11 + $0x8] sm:$0xff] %v439_v22 }
  0xfc   : > { %660 = shalt.err (!%p657_p5)
}
  0xfd   : > { %s661_s27 = scalar_lea.hbm %s836_s15, 256  ;;  %s665_s8 = scalar_lea.hbm %s888_s5, 512 }
  0xfe   : > { %p662_p6 = scmp.ne.s32.totalorder %s836_s15, %s661_s27  ;;  %p666_p10 = scmp.lt.u32.totalorder %s836_s15, %s888_s5 }
  0xff   : > { %p667_p11 = scmp.lt.u32.totalorder %s665_s8, %s661_s27  ;;  %p669_p13 = scmp.lt.u32.totalorder %s661_s27, %s836_s15 }
 0x100   : > { %p663_p7 = pnand %p662_p6, %p799_p4 }
 0x101   : > { %p668_p12 = por %p667_p11, %p666_p10 }
 0x102   : > { %p664_p9 = pneg %p663_p7 }
 0x103   : > { %p670_p0 = por %p669_p13, %p668_p12 }
 0x105   : > { %p671_p1 = pnand %p670_p0, %p664_p9 }
 0x107   : > { %674 = shalt.err (!%p671_p1)
}
 0x108   : > { %590 = dma.vmem_to_hbm [thread:$0]  (%p799_p4), %s838_s12, 256, %s836_s15, %s443_s21  }
 0x109 PF: > { %p596_p2 = scmp.ge.s32.totalorder %s725_s23, 2  ;;  %s471_s11 = sand.u32 1, %s705_s18  }
 0x10a   : > { %s472_s13 = scalar_lea.sflag [#allocation3], %s471_s11 }
 0x10b   : > { %p593_p3 = pnand %p596_p2, %p806_p8 }
 0x10d   : > { %700 = dma.done.wait (!%p593_p3), %s472_s13, 256  }
 0x10e   : > { %702 = vsyncadd (!%p593_p3), %s472_s13, 4294967040  ;;  %s18_s23 = sadd.s32 1, %s725_s23   ;;  %s891_s18 = smov %s709_s19 }
 0x10f   : > { %p15_p5 = scmp.ge.s32.totalorder %s18_s23, 4   ;;  %s892_s19 = smov %s713_s20 }
 0x110   : > { %s893_s20 = smov %s812_s6  ;;  %s894_s21 = smov %s721_s22 }
 0x111   : > { %s895_s22 = smov %s897_s26  ;;  %17 = sbr.rel (!%p15_p5) target bundleno = 4 (0x4), region = 81 }
 0x118   :  { %477 = vsyncpa [#allocation3], 1 }
 0x119   :  { %479 = vsyncpa [#allocation3 + $0x1], 1 }

</bundles_post_ra>
